<compile_context>
chip_gen: v6e
topology: v6e:2x2x1
jax: 0.10.0
libtpu: 0.0.40
codegen_flags: <defaults>
</compile_context>

<pallas_src>
import functools

import jax
import jax.numpy as jnp
from jax.experimental import pallas as pl
from jax.experimental.pallas import tpu as pltpu

LANES = 128
SUBLANES = 8
TARGET_BLOCK_BYTES = 4 * 1024 * 1024  # ~4 MiB per input block (HBM-bound sweet spot)


def _strip_sum(diff, block_rows):
    """Sum diff (block_rows, 128) over axis 0 -> (1, 128) via a few independent
    partial chains (tree-combined) so the cross-vreg adds can pipeline across
    the 4 VALUs instead of forming one serial dependency chain (v7x-critical)."""
    strips = 1
    for cand in (8, 4, 2):
        if block_rows % (cand * SUBLANES) == 0 and block_rows >= cand * SUBLANES:
            strips = cand
            break
    if strips == 1:
        return jnp.sum(diff, axis=0, keepdims=True)
    strip = block_rows // strips
    parts = [
        jnp.sum(diff[j * strip:(j + 1) * strip, :], axis=0, keepdims=True)
        for j in range(strips)
    ]
    while len(parts) > 1:  # small static tree combine
        parts = [parts[k] + parts[k + 1] for k in range(0, len(parts), 2)]
    return parts[0]


def _l1_partial_sum_kernel(pred_ref, target_ref, out_ref, *, block_rows,
                           total_rows, steps_per_core, needs_mask):
    """Accumulates 128 lane-partial sums of |pred - target| into out_ref (1,128)."""
    c = pl.program_id(0)   # per-TensorCore shard (parallel axis)
    i = pl.program_id(1)   # reduction steps (arbitrary axis)

    @pl.when(i == 0)
    def _():
        out_ref[...] = jnp.zeros_like(out_ref)

    p = pred_ref[...].astype(jnp.float32)
    t = target_ref[...].astype(jnp.float32)
    diff = jnp.abs(p - t)

    if not needs_mask:
        # Every block is full and every grid step maps to a distinct block.
        out_ref[...] += _strip_sum(diff, block_rows)
    else:
        # Only the ragged last block (and any clamped duplicate step when the
        # block count does not split evenly across cores) needs masking; the
        # iota/compare/select work is gated behind pl.when so full blocks stay
        # on the cheap path.
        block_start = (c * steps_per_core + i) * block_rows
        is_full = block_start + block_rows <= total_rows

        @pl.when(is_full)
        def _():
            out_ref[...] += _strip_sum(diff, block_rows)

        @pl.when(jnp.logical_not(is_full))
        def _():
            local_row = jax.lax.broadcasted_iota(jnp.int32, diff.shape, 0)
            masked = jnp.where(block_start + local_row < total_rows, diff, 0.0)
            out_ref[...] += _strip_sum(masked, block_rows)


def l1_loss(pred, target, weight=1.0):
    """weight * mean(|pred - target|), matching torch.nn.functional.l1_loss."""
    assert pred.shape == target.shape, "broadcasting not supported (same-shape L1)"
    # TODO(synk): reduction='sum'/'none' and broadcasting variants are not implemented.
    if pred.dtype != target.dtype:
        common = jnp.promote_types(pred.dtype, target.dtype)
        pred, target = pred.astype(common), target.astype(common)

    n = pred.size
    pred_f = jnp.ravel(pred)
    target_f = jnp.ravel(target)

    rows = n // LANES
    rem = n - rows * LANES

    total = jnp.zeros((), jnp.float32)

    if rows > 0:
        # Contiguous prefix of full 128-lane rows. When n % 128 == 0 (the common
        # case) the slice is full-extent and the reshape is free -> zero copies.
        # TODO(synk): when n % 128 != 0 the prefix slice materializes one copy.
        pred_2d = pred_f[: rows * LANES].reshape(rows, LANES)
        target_2d = target_f[: rows * LANES].reshape(rows, LANES)

        itemsize = jnp.dtype(pred.dtype).itemsize
        packing = SUBLANES * max(1, 4 // itemsize)            # sublane packing of dtype
        max_rows = TARGET_BLOCK_BYTES // (LANES * itemsize)    # ~4 MiB per input block
        max_rows = (max_rows // packing) * packing
        block_rows = rows if rows <= max_rows else max_rows

        nb = -(-rows // block_rows)  # number of row blocks
        # Shard the row range across 2 TensorCores (v7x ~2x; near-zero cost on
        # 1-TC v5e/v6e). Only split when any clamped duplicate step is cheap.
        num_cores = 2 if (nb >= 2 and (nb % 2 == 0 or nb >= 8)) else 1
        steps = -(-nb // num_cores)
        needs_mask = (rows % block_rows != 0) or (num_cores * steps != nb)

        def in_map(c, i):
            # Clamp so a (fully masked-out) duplicate step never issues an OOB DMA.
            return (jnp.minimum(c * steps + i, nb - 1), 0)

        kernel = functools.partial(
            _l1_partial_sum_kernel,
            block_rows=block_rows, total_rows=rows,
            steps_per_core=steps, needs_mask=needs_mask,
        )

        partials = pl.pallas_call(
            kernel,
            out_shape=jax.ShapeDtypeStruct((num_cores, LANES), jnp.float32),
            grid_spec=pltpu.PrefetchScalarGridSpec(
                num_scalar_prefetch=0,
                grid=(num_cores, steps),
                in_specs=[
                    pl.BlockSpec((block_rows, LANES), in_map),
                    pl.BlockSpec((block_rows, LANES), in_map),
                ],
                # Per-core resident lane accumulator: same output block across
                # the reduction axis, distinct block per parallel core.
                out_specs=pl.BlockSpec((1, LANES), lambda c, i: (c, 0)),
            ),
            compiler_params=pltpu.CompilerParams(
                dimension_semantics=("parallel", "arbitrary"),
                # 2 inputs x 2 buffers x 4 MiB = 16 MiB working set; v5e's
                # default scoped VMEM is 16 MiB, so raise the limit (still well
                # within v7x's 64 MiB physical VMEM per core).
                vmem_limit_bytes=32 * 1024 * 1024,
            ),
        )(pred_2d, target_2d)

        total = total + jnp.sum(partials)

    if rem > 0:
        # < 128 leftover elements: trivial XLA reduce, keeps the kernel aligned
        # without padding or copying the full arrays.
        tail = jnp.abs(pred_f[rows * LANES:].astype(jnp.float32)
                       - target_f[rows * LANES:].astype(jnp.float32))
        total = total + jnp.sum(tail)

    # Final cross-lane reduce + (weight / n) scaling on <= 256 floats in the
    # wrapper: negligible, and keeps traced scalars out of the kernel body.
    return (weight / n) * total


class L1Loss:
    """Mirror of the PyTorch module: loss = weight * mean(|pred - target|)."""

    def __init__(self, weight=1.0):
        self.weight = weight

    def __call__(self, pred, target):
        return l1_loss(pred, target, self.weight)


if __name__ == "__main__":
    key = jax.random.PRNGKey(0)
    k1, k2 = jax.random.split(key)

    # small NCHW shapes, as the module's forward implies image-like tensors
    pred = jax.random.normal(k1, (2, 4, 16, 16), dtype=jnp.float32)
    target = jax.random.normal(k2, (2, 4, 16, 16), dtype=jnp.float32)

    loss_mod = L1Loss(weight=1.0)
    loss = loss_mod(pred, target)
    jax.block_until_ready(loss)
    ref = 1.0 * jnp.mean(jnp.abs(pred - target))
    assert jnp.allclose(loss, ref, rtol=1e-5, atol=1e-6), (loss, ref)

    # ragged element count (n % 128 != 0): kernel prefix + wrapper-side tail
    p2 = jax.random.normal(k1, (3, 5, 7, 11), dtype=jnp.float32)
    t2 = jax.random.normal(k2, (3, 5, 7, 11), dtype=jnp.float32)
    l2 = l1_loss(p2, t2, weight=0.5)
    r2 = 0.5 * jnp.mean(jnp.abs(p2 - t2))
    assert jnp.allclose(l2, r2, rtol=1e-5, atol=1e-6), (l2, r2)

    # multi-block grid with a ragged last block (single-core reduction path)
    p3 = jax.random.normal(k1, (2, 4, 512, 520), dtype=jnp.float32)
    t3 = jax.random.normal(k2, (2, 4, 512, 520), dtype=jnp.float32)
    l3 = l1_loss(p3, t3, weight=2.0)
    r3 = 2.0 * jnp.mean(jnp.abs(p3 - t3))
    assert jnp.allclose(l3, r3, rtol=1e-5, atol=1e-6), (l3, r3)

    # two-way parallel split (even block count) with a ragged last block
    p4 = jax.random.normal(k1, (1, 8, 384, 500), dtype=jnp.float32)
    t4 = jax.random.normal(k2, (1, 8, 384, 500), dtype=jnp.float32)
    l4 = l1_loss(p4, t4, weight=0.25)
    r4 = 0.25 * jnp.mean(jnp.abs(p4 - t4))
    assert jnp.allclose(l4, r4, rtol=1e-5, atol=1e-6), (l4, r4)

    print("KERNEL_OK")
</pallas_src>

<mosaic_0001>
module attributes {stable_mosaic.version = 11 : i64} {
  func.func @_l1_partial_sum_kernel(%arg0: i32, %arg1: i32, %arg2: memref<16x128xf32, #tpu.memory_space<vmem>>, %arg3: memref<16x128xf32, #tpu.memory_space<vmem>>, %arg4: memref<1x128xf32, #tpu.memory_space<vmem>>) attributes {dimension_semantics = [#tpu.dimension_semantics<parallel>, #tpu.dimension_semantics<arbitrary>], iteration_bounds = array<i64: 1, 1>, scalar_prefetch = 0 : i64, scratch_operands = 0 : i64, tpu.core_type = #tpu.core_type<tc>, window_params = [{transform_indices = @transform_0, window_bounds = array<i64: 16, 128>}, {transform_indices = @transform_1, window_bounds = array<i64: 16, 128>}, {transform_indices = @transform_2, window_bounds = array<i64: 1, 128>}]} {
    %c0_i32 = arith.constant 0 : i32
    %0 = arith.cmpi eq, %arg1, %c0_i32 : i32
    %1 = arith.extui %0 : i1 to i32
    %c0_i32_0 = arith.constant 0 : i32
    %2 = arith.cmpi ne, %1, %c0_i32_0 : i32
    scf.if %2 {
      %cst_9 = arith.constant 0.000000e+00 : f32
      %17 = vector.broadcast %cst_9 : f32 to vector<1x128xf32>
      %c0_10 = arith.constant 0 : index
      %c0_11 = arith.constant 0 : index
      %18 = vector.load %arg4[%c0_10, %c0_11] : memref<1x128xf32, #tpu.memory_space<vmem>>, vector<1x128xf32>
      tpu.vector_store %arg4[%c0_10, %c0_11], %17 {strides = array<i32>} : memref<1x128xf32, #tpu.memory_space<vmem>>, vector<1x128xf32>,
    } else {
    }
    %c0 = arith.constant 0 : index
    %c0_1 = arith.constant 0 : index
    %3 = vector.load %arg2[%c0, %c0_1] : memref<16x128xf32, #tpu.memory_space<vmem>>, vector<16x128xf32>
    %c0_2 = arith.constant 0 : index
    %c0_3 = arith.constant 0 : index
    %4 = vector.load %arg3[%c0_2, %c0_3] : memref<16x128xf32, #tpu.memory_space<vmem>>, vector<16x128xf32>
    %5 = arith.subf %3, %4 : vector<16x128xf32>
    %6 = math.absf %5 : vector<16x128xf32>
    %c0_4 = arith.constant 0 : index
    %c0_5 = arith.constant 0 : index
    %7 = vector.load %arg4[%c0_4, %c0_5] : memref<1x128xf32, #tpu.memory_space<vmem>>, vector<1x128xf32>
    %8 = vector.extract_strided_slice %6 {offsets = [0, 0], sizes = [8, 128], strides = [1, 1]} : vector<16x128xf32> to vector<8x128xf32>
    %cst = arith.constant dense<0.000000e+00> : vector<128xf32>
    %9 = vector.multi_reduction <add>, %8, %cst [0] : vector<8x128xf32> to vector<128xf32>
    %10 = vector.shape_cast %9 : vector<128xf32> to vector<1x128xf32>
    %11 = vector.extract_strided_slice %6 {offsets = [8, 0], sizes = [8, 128], strides = [1, 1]} : vector<16x128xf32> to vector<8x128xf32>
    %cst_6 = arith.constant dense<0.000000e+00> : vector<128xf32>
    %12 = vector.multi_reduction <add>, %11, %cst_6 [0] : vector<8x128xf32> to vector<128xf32>
    %13 = vector.shape_cast %12 : vector<128xf32> to vector<1x128xf32>
    %14 = arith.addf %10, %13 : vector<1x128xf32>
    %15 = arith.addf %7, %14 : vector<1x128xf32>
    %c0_7 = arith.constant 0 : index
    %c0_8 = arith.constant 0 : index
    %16 = vector.load %arg4[%c0_7, %c0_8] : memref<1x128xf32, #tpu.memory_space<vmem>>, vector<1x128xf32>
    tpu.vector_store %arg4[%c0_7, %c0_8], %15 {strides = array<i32>} : memref<1x128xf32, #tpu.memory_space<vmem>>, vector<1x128xf32>,
    return
  }
  func.func @transform_0(%arg0: i32, %arg1: i32) -> (i32, i32) {
    %c1_i32 = arith.constant 1 : i32
    %0 = arith.muli %arg0, %c1_i32 : i32
    %1 = arith.addi %0, %arg1 : i32
    %c0_i32 = arith.constant 0 : i32
    %2 = arith.minsi %1, %c0_i32 : i32
    %c0_i32_0 = arith.constant 0 : i32
    %c0_i32_1 = arith.constant 0 : i32
    return %2, %c0_i32_0 : i32, i32
  }
  func.func @transform_1(%arg0: i32, %arg1: i32) -> (i32, i32) {
    %c1_i32 = arith.constant 1 : i32
    %0 = arith.muli %arg0, %c1_i32 : i32
    %1 = arith.addi %0, %arg1 : i32
    %c0_i32 = arith.constant 0 : i32
    %2 = arith.minsi %1, %c0_i32 : i32
    %c0_i32_0 = arith.constant 0 : i32
    %c0_i32_1 = arith.constant 0 : i32
    return %2, %c0_i32_0 : i32, i32
  }
  func.func @transform_2(%arg0: i32, %arg1: i32) -> (i32, i32) {
    %c0_i32 = arith.constant 0 : i32
    %c0_i32_0 = arith.constant 0 : i32
    return %arg0, %c0_i32 : i32, i32
  }
}

</mosaic_0001>

<bundles_post_ra>
// kernel: tpu_custom_call.1
= control target key start
LH: loop header
LB: loop body
LE: loop exit
PB: predicated region body
PF: predicated region fallthrough
CT: control target
= control target key end

     0   :  { %7 = vsyncpa [#allocation3], 0  ;;  %s211_s0 = inlined_call_operand.hbm [shape: f32[16,128], index: 0, kind: input, shape index: {}]   ;;  %s212_s1 = inlined_call_operand.hbm [shape: f32[16,128], index: 1, kind: input, shape index: {}]   ;;  %s213_s2 = inlined_call_operand.hbm [shape: f32[1,128], index: 2, kind: output, shape index: {}]  }
   0x1   :  { %8 = vsyncpa [#allocation6], 0 }
   0x2   :  { %9 = vsyncpa [#allocation4], 0  ;;  %s181_s9 = smov [#allocation2]  }
   0x3   :  { %s21_s10 = sshll.u32 %s181_s9, 4  ;;  %s22_s10 = int_to_ptr.vmem [resolvable:$true] %s21_s10 }
   0x4   :  { %s123_s11 = scalar_lea.vmem %s22_s10, 256  ;;  %p128_p1 = scmp.lt.s32.totalorder %s22_s10, %s22_s10 }
   0x5   :  { %p124_p0 = scmp.ne.s32.totalorder %s22_s10, %s123_s11  ;;  %p129_p2 = scmp.lt.s32.totalorder %s123_s11, %s123_s11 }
   0x7   :  { %p130_p3 = por %p129_p2, %p128_p1 }
   0x9   :  { %p131_p4 = pnand %p130_p3, %p124_p0 }
   0xb   :  { %134 = shalt.err (!%p131_p4)
}
   0xc   :  { %s182_s12 = smov 128   ;;  %s183_s13 = smov 8  }
   0xd   :  { %27 = dma.hbm_to_vmem [thread:$0]  %s211_s0, 256, %s22_s10, [#allocation3], %s182_s12, %s182_s12, %s183_s13  }
   0xe   :  { %s184_s16 = smov [#allocation5]  }
   0xf   :  { %s39_s17 = sshll.u32 %s184_s16, 4  ;;  %s40_s17 = int_to_ptr.vmem [resolvable:$true] %s39_s17 }
  0x10   :  { %s143_s18 = scalar_lea.vmem %s40_s17, 256  ;;  %p148_p6 = scmp.lt.s32.totalorder %s40_s17, %s40_s17 }
  0x11   :  { %p144_p5 = scmp.ne.s32.totalorder %s40_s17, %s143_s18  ;;  %p149_p7 = scmp.lt.s32.totalorder %s143_s18, %s143_s18 }
  0x13   :  { %p150_p8 = por %p149_p7, %p148_p6 }
  0x15   :  { %p151_p9 = pnand %p150_p8, %p144_p5 }
  0x17   :  { %154 = shalt.err (!%p151_p9)
}
  0x18   :  { %45 = dma.hbm_to_vmem [thread:$0]  %s212_s1, 256, %s40_s17, [#allocation6], %s182_s12, %s182_s12, %s183_s13  }
  0x19   :  { %175 = dma.done.wait [#allocation3], 256  }
  0x1a   :  { %176 = vsyncadd [#allocation3], 4294967040 }
  0x1b   :  { %177 = dma.done.wait [#allocation6], 256  }
  0x1c   :  { %178 = vsyncadd [#allocation6], 4294967040  ;;  %v185_v0 = vmov 0.0   ;;  %v65_v1 = vld [vmem:[#allocation2] sm:$0xff]  ;;  %v66_v2 = vld [vmem:[#allocation2 + $0x8] sm:$0xff]  ;;  %s186_s0 = smov [#allocation7]  }
  0x1d   :  { %64 = vst [vmem:[#allocation7] sm:$0x1] %v185_v0  ;;  %v67_v3 = vld [vmem:[#allocation5] sm:$0xff]  ;;  %v68_v4 = vld [vmem:[#allocation5 + $0x8] sm:$0xff]  ;;  %s95_s1 = sshll.u32 %s186_s0, 4  ;;  %s96_s1 = int_to_ptr.vmem [resolvable:$true] %s95_s1 }
  0x1e   :  { %v69_v5 = vsub.f32 %v65_v1, %v67_v3  ;;  %v70_v6 = vsub.f32 %v66_v2, %v68_v4  ;;  %s155_s21 = scalar_lea.vmem %s96_s1, 16  ;;  %s159_s22 = scalar_lea.vmem %s96_s1, 32 }
  0x1f   :  { %p156_p10 = scmp.ne.s32.totalorder %s96_s1, %s155_s21  ;;  %p160_p11 = scmp.lt.s32.totalorder %s96_s1, %s96_s1 }
  0x20   :  { %v71_v7 = vand.u32 2147483647, %v69_v5  ;;  %v72_v8 = vand.u32 2147483647, %v70_v6  ;;  %p161_p12 = scmp.lt.s32.totalorder %s159_s22, %s155_s21 }
  0x22   :  { %v74_v9 = vrot.slane %v71_v7, 4  ;;  %v80_v10 = vrot.slane %v72_v8, 4  ;;  %p162_p13 = por %p161_p12, %p160_p11 }
  0x24   :  { %v75_v11 = vadd.f32 %v74_v9, %v71_v7  ;;  %v81_v12 = vadd.f32 %v80_v10, %v72_v8  ;;  %v73_v21 = vld [vmem:[#allocation7] sm:$0x1]  ;;  %p163_p0 = pnand %p162_p13, %p156_p10 }
  0x26   :  { %v76_v13 = vrot.slane %v75_v11, 2  ;;  %v82_v14 = vrot.slane %v81_v12, 2 }
  0x28   :  { %v77_v15 = vadd.f32 %v76_v13, %v75_v11  ;;  %v83_v16 = vadd.f32 %v82_v14, %v81_v12 }
  0x2a   :  { %v78_v17 = vrot.slane %v77_v15, 1  ;;  %v84_v18 = vrot.slane %v83_v16, 1 }
  0x2c   :  { %v79_v19 = vadd.f32 %v78_v17, %v77_v15  ;;  %v85_v20 = vadd.f32 %v84_v18, %v83_v16 }
  0x2e   :  { %v86_v22 = vadd.f32 %v85_v20, %v79_v19 }
  0x30   :  { %v87_v23 = vadd.f32 %v86_v22, %v73_v21 }
  0x32   :  { %88 = vst [vmem:[#allocation7] sm:$0x1] %v87_v23 }
  0x33   :  { %166 = shalt.err (!%p163_p0)
}
  0x34   :  { %98 = dma.vmem_to_hbm [thread:$0]  %s96_s1, 16, %s213_s2, [#allocation4]  }
  0x35   :  { %179 = dma.done.wait [#allocation4], 16  }
  0x36   :  { %180 = vsyncadd [#allocation4], 4294967280 }
  0x37   :  { %102 = vsyncpa [#allocation3], 1 }
  0x38   :  { %103 = vsyncpa [#allocation6], 1 }
  0x39   :  { %104 = vsyncpa [#allocation4], 1 }

</bundles_post_ra>
